<compile_context>
chip_gen: v5e
topology: v5e:2x2
jax: 0.10.0
libtpu: 0.0.40
codegen_flags: <defaults>
</compile_context>

<pallas_src>
from functools import partial

import jax
import jax.numpy as jnp
from jax.experimental import pallas as pl
from jax.experimental.pallas import tpu as pltpu

P = 128          # lane-dense feature width (all layer dims padded to this)
N_LAYERS = 8     # 4 encoder + 4 decoder linears


def _portrayer1_kernel(x_ref, w_ref, b_ref, out_ref):
    # x_ref:   (Bp, P)        padded activations
    # w_ref:   (8, P, P)      packed padded weights, layer i = w_ref[i]
    # b_ref:   (8, 1, P)      packed padded biases,  layer i = b_ref[i]
    h = x_ref[...]
    for i in range(N_LAYERS):
        h = jnp.dot(h, w_ref[i], preferred_element_type=jnp.float32) + b_ref[i]
        if i not in (3, 7):          # no ReLU after encoder4 / decoder4
            h = jnp.maximum(h, 0.0)
    out_ref[...] = h


def _pallas_forward(x_pad, w_slab, b_slab):
    Bp, Pp = x_pad.shape
    return pl.pallas_call(
        _portrayer1_kernel,
        out_shape=jax.ShapeDtypeStruct((Bp, Pp), jnp.float32),
        grid=(),
        in_specs=[
            pl.BlockSpec((Bp, Pp), lambda: (0, 0)),
            pl.BlockSpec(w_slab.shape, lambda: (0, 0, 0)),
            pl.BlockSpec(b_slab.shape, lambda: (0, 0, 0)),
        ],
        out_specs=pl.BlockSpec((Bp, Pp), lambda: (0, 0)),
        input_output_aliases={0: 0},   # x_pad buffer reused as output slab
        compiler_params=pltpu.CompilerParams(vmem_limit_bytes=4 << 20),
    )(x_pad, w_slab, b_slab)


@jax.jit
def portrayer1_forward(x, w_slab, b_slab):
    """x: (B, y_in) float32. w_slab: (8, P, P). b_slab: (8, 1, P)."""
    B, y_in = x.shape
    Bp = max(8, ((B + 7) // 8) * 8)                       # sublane-aligned batch
    x_pad = jnp.zeros((Bp, P), jnp.float32).at[:B, :y_in].set(x)
    out_pad = _pallas_forward(x_pad, w_slab, b_slab)
    return out_pad[:B, :y_in]


def pack_params(params, pad=P):
    """params: 8 (W, b) pairs with W as (in, out). Returns (w_slab, b_slab)."""
    ws, bs = [], []
    for w, b in params:
        fi, fo = w.shape
        assert fi <= pad and fo <= pad, "layer dims must be <= 128 for this packing"
        ws.append(jnp.zeros((pad, pad), jnp.float32).at[:fi, :fo].set(w))
        bs.append(jnp.zeros((1, pad), jnp.float32).at[0, :fo].set(jnp.reshape(b, (-1,))))
    return jnp.stack(ws), jnp.stack(bs)


def init_params(key, dims):
    """dims = [y_in, y1, y2, y3, y4]; 8 (W, b) pairs, W as (in, out).

    Deterministic init mimicking PyTorch nn.Linear default (uniform +-1/sqrt(fan_in)).
    """
    layer_io = [
        (dims[0], dims[1]), (dims[1], dims[2]), (dims[2], dims[3]), (dims[3], dims[4]),  # encoder
        (dims[4], dims[3]), (dims[3], dims[2]), (dims[2], dims[1]), (dims[1], dims[0]),  # decoder
    ]
    params = []
    for (fan_in, fan_out) in layer_io:
        key, kw, kb = jax.random.split(key, 3)
        bound = 1.0 / jnp.sqrt(fan_in)
        w = jax.random.uniform(kw, (fan_in, fan_out), jnp.float32, -bound, bound)
        b = jax.random.uniform(kb, (fan_out,), jnp.float32, -bound, bound)
        params.append((w, b))
    return params


def reference_forward(x, params):
    h = x
    for i, (w, b) in enumerate(params):
        h = h @ w + b
        if i not in (3, 7):
            h = jnp.maximum(h, 0.0)
    return h


if __name__ == "__main__":
    key = jax.random.PRNGKey(0)
    kx, kp = jax.random.split(key)

    B = 8
    dims = [32, 64, 48, 32, 16]  # y_in, y1, y2, y3, y4

    x = jax.random.normal(kx, (B, dims[0]), jnp.float32)
    params = init_params(kp, dims)
    w_slab, b_slab = pack_params(params)     # done once; reused across calls

    out = portrayer1_forward(x, w_slab, b_slab)
    out = jax.block_until_ready(out)

    ref = reference_forward(x, params)
    assert out.shape == (B, dims[0])
    assert jnp.allclose(out, ref, atol=1e-4, rtol=1e-4), "mismatch vs reference"

    print("KERNEL_OK")
</pallas_src>

<mosaic_0001>
module attributes {stable_mosaic.version = 11 : i64} {
  func.func @_portrayer1_kernel(%arg0: memref<8x128xf32, #tpu.memory_space<vmem>>, %arg1: memref<8x128x128xf32, #tpu.memory_space<vmem>>, %arg2: memref<8x1x128xf32, #tpu.memory_space<vmem>>, %arg3: memref<8x128xf32, #tpu.memory_space<vmem>>) attributes {dimension_semantics = [], scalar_prefetch = 0 : i64, scratch_operands = 0 : i64, tpu.core_type = #tpu.core_type<tc>} {
    %c0 = arith.constant 0 : index
    %c0_0 = arith.constant 0 : index
    %0 = vector.load %arg0[%c0, %c0_0] : memref<8x128xf32, #tpu.memory_space<vmem>>, vector<8x128xf32>
    %c0_1 = arith.constant 0 : index
    %c0_2 = arith.constant 0 : index
    %c0_3 = arith.constant 0 : index
    %1 = vector.load %arg1[%c0_1, %c0_2, %c0_3] : memref<8x128x128xf32, #tpu.memory_space<vmem>>, vector<1x128x128xf32>
    %2 = vector.shape_cast %1 : vector<1x128x128xf32> to vector<128x128xf32>
    %cst = arith.constant dense<0.000000e+00> : vector<8x128xf32>
    %3 = tpu.matmul %0, %2, %cst {dimension_numbers = #tpu.dot_dimension_numbers<[1], [0], [0], [1], [0, 0, 1, 1], [], []>} : vector<8x128xf32>, vector<128x128xf32>, vector<8x128xf32> -> vector<8x128xf32>
    %c0_4 = arith.constant 0 : index
    %c0_5 = arith.constant 0 : index
    %c0_6 = arith.constant 0 : index
    %4 = vector.load %arg2[%c0_4, %c0_5, %c0_6] : memref<8x1x128xf32, #tpu.memory_space<vmem>>, vector<1x1x128xf32>
    %5 = vector.shape_cast %4 : vector<1x1x128xf32> to vector<1x128xf32>
    %6 = vector.broadcast %5 : vector<1x128xf32> to vector<8x128xf32>
    %7 = arith.addf %3, %6 : vector<8x128xf32>
    %cst_7 = arith.constant 0.000000e+00 : f32
    %8 = vector.broadcast %cst_7 : f32 to vector<8x128xf32>
    %9 = arith.maximumf %7, %8 : vector<8x128xf32>
    %c1 = arith.constant 1 : index
    %c0_8 = arith.constant 0 : index
    %c0_9 = arith.constant 0 : index
    %10 = vector.load %arg1[%c1, %c0_8, %c0_9] : memref<8x128x128xf32, #tpu.memory_space<vmem>>, vector<1x128x128xf32>
    %11 = vector.shape_cast %10 : vector<1x128x128xf32> to vector<128x128xf32>
    %cst_10 = arith.constant dense<0.000000e+00> : vector<8x128xf32>
    %12 = tpu.matmul %9, %11, %cst_10 {dimension_numbers = #tpu.dot_dimension_numbers<[1], [0], [0], [1], [0, 0, 1, 1], [], []>} : vector<8x128xf32>, vector<128x128xf32>, vector<8x128xf32> -> vector<8x128xf32>
    %c1_11 = arith.constant 1 : index
    %c0_12 = arith.constant 0 : index
    %c0_13 = arith.constant 0 : index
    %13 = vector.load %arg2[%c1_11, %c0_12, %c0_13] : memref<8x1x128xf32, #tpu.memory_space<vmem>>, vector<1x1x128xf32>
    %14 = vector.shape_cast %13 : vector<1x1x128xf32> to vector<1x128xf32>
    %15 = vector.broadcast %14 : vector<1x128xf32> to vector<8x128xf32>
    %16 = arith.addf %12, %15 : vector<8x128xf32>
    %cst_14 = arith.constant 0.000000e+00 : f32
    %17 = vector.broadcast %cst_14 : f32 to vector<8x128xf32>
    %18 = arith.maximumf %16, %17 : vector<8x128xf32>
    %c2 = arith.constant 2 : index
    %c0_15 = arith.constant 0 : index
    %c0_16 = arith.constant 0 : index
    %19 = vector.load %arg1[%c2, %c0_15, %c0_16] : memref<8x128x128xf32, #tpu.memory_space<vmem>>, vector<1x128x128xf32>
    %20 = vector.shape_cast %19 : vector<1x128x128xf32> to vector<128x128xf32>
    %cst_17 = arith.constant dense<0.000000e+00> : vector<8x128xf32>
    %21 = tpu.matmul %18, %20, %cst_17 {dimension_numbers = #tpu.dot_dimension_numbers<[1], [0], [0], [1], [0, 0, 1, 1], [], []>} : vector<8x128xf32>, vector<128x128xf32>, vector<8x128xf32> -> vector<8x128xf32>
    %c2_18 = arith.constant 2 : index
    %c0_19 = arith.constant 0 : index
    %c0_20 = arith.constant 0 : index
    %22 = vector.load %arg2[%c2_18, %c0_19, %c0_20] : memref<8x1x128xf32, #tpu.memory_space<vmem>>, vector<1x1x128xf32>
    %23 = vector.shape_cast %22 : vector<1x1x128xf32> to vector<1x128xf32>
    %24 = vector.broadcast %23 : vector<1x128xf32> to vector<8x128xf32>
    %25 = arith.addf %21, %24 : vector<8x128xf32>
    %cst_21 = arith.constant 0.000000e+00 : f32
    %26 = vector.broadcast %cst_21 : f32 to vector<8x128xf32>
    %27 = arith.maximumf %25, %26 : vector<8x128xf32>
    %c3 = arith.constant 3 : index
    %c0_22 = arith.constant 0 : index
    %c0_23 = arith.constant 0 : index
    %28 = vector.load %arg1[%c3, %c0_22, %c0_23] : memref<8x128x128xf32, #tpu.memory_space<vmem>>, vector<1x128x128xf32>
    %29 = vector.shape_cast %28 : vector<1x128x128xf32> to vector<128x128xf32>
    %cst_24 = arith.constant dense<0.000000e+00> : vector<8x128xf32>
    %30 = tpu.matmul %27, %29, %cst_24 {dimension_numbers = #tpu.dot_dimension_numbers<[1], [0], [0], [1], [0, 0, 1, 1], [], []>} : vector<8x128xf32>, vector<128x128xf32>, vector<8x128xf32> -> vector<8x128xf32>
    %c3_25 = arith.constant 3 : index
    %c0_26 = arith.constant 0 : index
    %c0_27 = arith.constant 0 : index
    %31 = vector.load %arg2[%c3_25, %c0_26, %c0_27] : memref<8x1x128xf32, #tpu.memory_space<vmem>>, vector<1x1x128xf32>
    %32 = vector.shape_cast %31 : vector<1x1x128xf32> to vector<1x128xf32>
    %33 = vector.broadcast %32 : vector<1x128xf32> to vector<8x128xf32>
    %34 = arith.addf %30, %33 : vector<8x128xf32>
    %c4 = arith.constant 4 : index
    %c0_28 = arith.constant 0 : index
    %c0_29 = arith.constant 0 : index
    %35 = vector.load %arg1[%c4, %c0_28, %c0_29] : memref<8x128x128xf32, #tpu.memory_space<vmem>>, vector<1x128x128xf32>
    %36 = vector.shape_cast %35 : vector<1x128x128xf32> to vector<128x128xf32>
    %cst_30 = arith.constant dense<0.000000e+00> : vector<8x128xf32>
    %37 = tpu.matmul %34, %36, %cst_30 {dimension_numbers = #tpu.dot_dimension_numbers<[1], [0], [0], [1], [0, 0, 1, 1], [], []>} : vector<8x128xf32>, vector<128x128xf32>, vector<8x128xf32> -> vector<8x128xf32>
    %c4_31 = arith.constant 4 : index
    %c0_32 = arith.constant 0 : index
    %c0_33 = arith.constant 0 : index
    %38 = vector.load %arg2[%c4_31, %c0_32, %c0_33] : memref<8x1x128xf32, #tpu.memory_space<vmem>>, vector<1x1x128xf32>
    %39 = vector.shape_cast %38 : vector<1x1x128xf32> to vector<1x128xf32>
    %40 = vector.broadcast %39 : vector<1x128xf32> to vector<8x128xf32>
    %41 = arith.addf %37, %40 : vector<8x128xf32>
    %cst_34 = arith.constant 0.000000e+00 : f32
    %42 = vector.broadcast %cst_34 : f32 to vector<8x128xf32>
    %43 = arith.maximumf %41, %42 : vector<8x128xf32>
    %c5 = arith.constant 5 : index
    %c0_35 = arith.constant 0 : index
    %c0_36 = arith.constant 0 : index
    %44 = vector.load %arg1[%c5, %c0_35, %c0_36] : memref<8x128x128xf32, #tpu.memory_space<vmem>>, vector<1x128x128xf32>
    %45 = vector.shape_cast %44 : vector<1x128x128xf32> to vector<128x128xf32>
    %cst_37 = arith.constant dense<0.000000e+00> : vector<8x128xf32>
    %46 = tpu.matmul %43, %45, %cst_37 {dimension_numbers = #tpu.dot_dimension_numbers<[1], [0], [0], [1], [0, 0, 1, 1], [], []>} : vector<8x128xf32>, vector<128x128xf32>, vector<8x128xf32> -> vector<8x128xf32>
    %c5_38 = arith.constant 5 : index
    %c0_39 = arith.constant 0 : index
    %c0_40 = arith.constant 0 : index
    %47 = vector.load %arg2[%c5_38, %c0_39, %c0_40] : memref<8x1x128xf32, #tpu.memory_space<vmem>>, vector<1x1x128xf32>
    %48 = vector.shape_cast %47 : vector<1x1x128xf32> to vector<1x128xf32>
    %49 = vector.broadcast %48 : vector<1x128xf32> to vector<8x128xf32>
    %50 = arith.addf %46, %49 : vector<8x128xf32>
    %cst_41 = arith.constant 0.000000e+00 : f32
    %51 = vector.broadcast %cst_41 : f32 to vector<8x128xf32>
    %52 = arith.maximumf %50, %51 : vector<8x128xf32>
    %c6 = arith.constant 6 : index
    %c0_42 = arith.constant 0 : index
    %c0_43 = arith.constant 0 : index
    %53 = vector.load %arg1[%c6, %c0_42, %c0_43] : memref<8x128x128xf32, #tpu.memory_space<vmem>>, vector<1x128x128xf32>
    %54 = vector.shape_cast %53 : vector<1x128x128xf32> to vector<128x128xf32>
    %cst_44 = arith.constant dense<0.000000e+00> : vector<8x128xf32>
    %55 = tpu.matmul %52, %54, %cst_44 {dimension_numbers = #tpu.dot_dimension_numbers<[1], [0], [0], [1], [0, 0, 1, 1], [], []>} : vector<8x128xf32>, vector<128x128xf32>, vector<8x128xf32> -> vector<8x128xf32>
    %c6_45 = arith.constant 6 : index
    %c0_46 = arith.constant 0 : index
    %c0_47 = arith.constant 0 : index
    %56 = vector.load %arg2[%c6_45, %c0_46, %c0_47] : memref<8x1x128xf32, #tpu.memory_space<vmem>>, vector<1x1x128xf32>
    %57 = vector.shape_cast %56 : vector<1x1x128xf32> to vector<1x128xf32>
    %58 = vector.broadcast %57 : vector<1x128xf32> to vector<8x128xf32>
    %59 = arith.addf %55, %58 : vector<8x128xf32>
    %cst_48 = arith.constant 0.000000e+00 : f32
    %60 = vector.broadcast %cst_48 : f32 to vector<8x128xf32>
    %61 = arith.maximumf %59, %60 : vector<8x128xf32>
    %c7 = arith.constant 7 : index
    %c0_49 = arith.constant 0 : index
    %c0_50 = arith.constant 0 : index
    %62 = vector.load %arg1[%c7, %c0_49, %c0_50] : memref<8x128x128xf32, #tpu.memory_space<vmem>>, vector<1x128x128xf32>
    %63 = vector.shape_cast %62 : vector<1x128x128xf32> to vector<128x128xf32>
    %cst_51 = arith.constant dense<0.000000e+00> : vector<8x128xf32>
    %64 = tpu.matmul %61, %63, %cst_51 {dimension_numbers = #tpu.dot_dimension_numbers<[1], [0], [0], [1], [0, 0, 1, 1], [], []>} : vector<8x128xf32>, vector<128x128xf32>, vector<8x128xf32> -> vector<8x128xf32>
    %c7_52 = arith.constant 7 : index
    %c0_53 = arith.constant 0 : index
    %c0_54 = arith.constant 0 : index
    %65 = vector.load %arg2[%c7_52, %c0_53, %c0_54] : memref<8x1x128xf32, #tpu.memory_space<vmem>>, vector<1x1x128xf32>
    %66 = vector.shape_cast %65 : vector<1x1x128xf32> to vector<1x128xf32>
    %67 = vector.broadcast %66 : vector<1x128xf32> to vector<8x128xf32>
    %68 = arith.addf %64, %67 : vector<8x128xf32>
    %c0_55 = arith.constant 0 : index
    %c0_56 = arith.constant 0 : index
    %69 = vector.load %arg3[%c0_55, %c0_56] : memref<8x128xf32, #tpu.memory_space<vmem>>, vector<8x128xf32>
    tpu.vector_store %arg3[%c0_55, %c0_56], %68 {strides = array<i32>} : memref<8x128xf32, #tpu.memory_space<vmem>>, vector<8x128xf32>,
    return
  }
}

</mosaic_0001>

<bundles_post_ra>
// kernel: portrayer1_forward.1
= control target key start
LH: loop header
LB: loop body
LE: loop exit
PB: predicated region body
PF: predicated region fallthrough
CT: control target
= control target key end

     0   :  { %8 = vsyncpa [#allocation3], 0  ;;  %s421_s15 = smov [#allocation2]   ;;  %s422_s17 = smov 128   ;;  %s477_s0 = inlined_call_operand.vmem [shape: f32[8,128], index: 0, kind: input, shape index: {}, may-alias: {0,3}]   ;;  %s478_s1 = inlined_call_operand.hbm [shape: f32[8,128,128], index: 1, kind: input, shape index: {}]   ;;  %s479_s2 = inlined_call_operand.vmem [shape: f32[8,1,128], index: 2, kind: input, shape index: {}]   ;;  %s480_s3 = inlined_call_operand.vmem [shape: f32[8,128], index: 3, kind: output, shape index: {}, may-alias: {0,3}]  }
   0x1   :  { %s15_s14 = sshll.u32 %s478_s1, 4  ;;  %s17_s16 = sshll.u32 %s421_s15, 4  ;;  %s16_s14 = int_to_ptr.hbm [resolvable:$true] %s15_s14  ;;  %s18_s16 = int_to_ptr.vmem [resolvable:$true] %s17_s16 }
   0x2   :  { %s423_s18 = smov 8  }
   0x3   :  { %23 = dma.hbm_to_vmem [thread:$0]  %s16_s14, 16384, %s18_s16, [#allocation3], %s422_s17, %s422_s17, %s423_s18  }
   0x4   :  { %419 = dma.done.wait [#allocation3], 16384  }
   0x5   :  { %420 = vsyncadd [#allocation3], 4294950912  ;;  %v46_v0 = vld [vmem:[#allocation2 + $0x78] sm:$0xff]  ;;  %v45_v1 = vld [vmem:[#allocation2 + $0x70] sm:$0xff] }
   0x6   :  { %51 = vmatpush.msra.mxu0 %v46_v0  ;;  %v44_v2 = vld [vmem:[#allocation2 + $0x68] sm:$0xff]  ;;  %v43_v3 = vld [vmem:[#allocation2 + $0x60] sm:$0xff]  ;;  %v88_v4 = vld [vmem:[#allocation2 + $0xf8] sm:$0xff] }
   0x7   :  { %v42_v5 = vld [vmem:[#allocation2 + $0x58] sm:$0xff]  ;;  %94 = vmatpush.msra.mxu1 %v88_v4  ;;  %v87_v6 = vld [vmem:[#allocation2 + $0xf0] sm:$0xff]  ;;  %v86_v7 = vld [vmem:[#allocation2 + $0xe8] sm:$0xff] }
   0x8   :  { %52 = vmatpush.msra.mxu0 %v45_v1  ;;  %v41_v8 = vld [vmem:[#allocation2 + $0x50] sm:$0xff]  ;;  %v40_v9 = vld [vmem:[#allocation2 + $0x48] sm:$0xff]  ;;  %v85_v10 = vld [vmem:[#allocation2 + $0xe0] sm:$0xff] }
   0x9   :  { %95 = vmatpush.msra.mxu1 %v87_v6  ;;  %v39_v11 = vld [vmem:[#allocation2 + $0x40] sm:$0xff]  ;;  %v84_v12 = vld [vmem:[#allocation2 + $0xd8] sm:$0xff]  ;;  %v83_v13 = vld [vmem:[#allocation2 + $0xd0] sm:$0xff] }
   0xa   :  { %53 = vmatpush.msra.mxu0 %v44_v2  ;;  %v38_v14 = vld [vmem:[#allocation2 + $0x38] sm:$0xff]  ;;  %v82_v15 = vld [vmem:[#allocation2 + $0xc8] sm:$0xff]  ;;  %v37_v16 = vld [vmem:[#allocation2 + $0x30] sm:$0xff] }
   0xb   :  { %96 = vmatpush.msra.mxu1 %v86_v7  ;;  %v81_v17 = vld [vmem:[#allocation2 + $0xc0] sm:$0xff]  ;;  %v36_v18 = vld [vmem:[#allocation2 + $0x28] sm:$0xff]  ;;  %v80_v19 = vld [vmem:[#allocation2 + $0xb8] sm:$0xff] }
   0xc   :  { %54 = vmatpush.msra.mxu0 %v43_v3  ;;  %v35_v20 = vld [vmem:[#allocation2 + $0x20] sm:$0xff]  ;;  %v79_v21 = vld [vmem:[#allocation2 + $0xb0] sm:$0xff]  ;;  %v34_v22 = vld [vmem:[#allocation2 + $0x18] sm:$0xff] }
   0xd   :  { %97 = vmatpush.msra.mxu1 %v85_v10  ;;  %v78_v23 = vld [vmem:[#allocation2 + $0xa8] sm:$0xff]  ;;  %v33_v24 = vld [vmem:[#allocation2 + $0x10] sm:$0xff]  ;;  %v77_v25 = vld [vmem:[#allocation2 + $0xa0] sm:$0xff] }
   0xe   :  { %55 = vmatpush.msra.mxu0 %v42_v5  ;;  %v32_v26 = vld [vmem:[#allocation2 + $0x8] sm:$0xff]  ;;  %v76_v27 = vld [vmem:[#allocation2 + $0x98] sm:$0xff]  ;;  %v31_v28 = vld [vmem:[#allocation2] sm:$0xff] }
   0xf   :  { %98 = vmatpush.msra.mxu1 %v84_v12  ;;  %v30_v29 = vld [vmem:[%s477_s0] sm:$0xff]  ;;  %v75_v30 = vld [vmem:[#allocation2 + $0x90] sm:$0xff]  ;;  %v74_v31 = vld [vmem:[#allocation2 + $0x88] sm:$0xff] }
  0x10   :  { %56 = vmatpush.msra.mxu0 %v41_v8  ;;  %v73_v32 = vld [vmem:[#allocation2 + $0x80] sm:$0xff]  ;;  %v131_v33 = vld [vmem:[#allocation2 + $0x178] sm:$0xff]  ;;  %v130_v34 = vld [vmem:[#allocation2 + $0x170] sm:$0xff] }
  0x11   :  { %99 = vmatpush.msra.mxu1 %v83_v13  ;;  %137 = vmatpush.msra.mxu2 %v131_v33  ;;  %v129_v35 = vld [vmem:[#allocation2 + $0x168] sm:$0xff]  ;;  %v128_v36 = vld [vmem:[#allocation2 + $0x160] sm:$0xff]  ;;  %v127_v37 = vld [vmem:[#allocation2 + $0x158] sm:$0xff] }
  0x12   :  { %57 = vmatpush.msra.mxu0 %v40_v9  ;;  %v126_v38 = vld [vmem:[#allocation2 + $0x150] sm:$0xff]  ;;  %v125_v39 = vld [vmem:[#allocation2 + $0x148] sm:$0xff]  ;;  %v124_v40 = vld [vmem:[#allocation2 + $0x140] sm:$0xff] }
  0x13   :  { %100 = vmatpush.msra.mxu1 %v82_v15  ;;  %138 = vmatpush.msra.mxu2 %v130_v34  ;;  %v123_v41 = vld [vmem:[#allocation2 + $0x138] sm:$0xff]  ;;  %v122_v42 = vld [vmem:[#allocation2 + $0x130] sm:$0xff]  ;;  %v121_v43 = vld [vmem:[#allocation2 + $0x128] sm:$0xff] }
  0x14   :  { %58 = vmatpush.msra.mxu0 %v39_v11  ;;  %v120_v44 = vld [vmem:[#allocation2 + $0x120] sm:$0xff]  ;;  %v119_v45 = vld [vmem:[#allocation2 + $0x118] sm:$0xff]  ;;  %v118_v50 = vld [vmem:[#allocation2 + $0x110] sm:$0xff] }
  0x15   :  { %101 = vmatpush.msra.mxu1 %v81_v17  ;;  %139 = vmatpush.msra.mxu2 %v129_v35  ;;  %v387_v46 = vld [vmem:[%s479_s2] ss:$0 sm:$0xff]  ;;  %v117_v51 = vld [vmem:[#allocation2 + $0x108] sm:$0xff]  ;;  %v174_v53 = vld [vmem:[#allocation2 + $0x1f8] sm:$0xff] }
  0x16   :  { %59 = vmatpush.msra.mxu0 %v38_v14  ;;  %v116_v52 = vld [vmem:[#allocation2 + $0x100] sm:$0xff]  ;;  %v173_v54 = vld [vmem:[#allocation2 + $0x1f0] sm:$0xff]  ;;  %180 = vmatpush.msra.mxu3 %v174_v53  ;;  %v172_v55 = vld [vmem:[#allocation2 + $0x1e8] sm:$0xff] }
  0x17   :  { %102 = vmatpush.msra.mxu1 %v80_v19  ;;  %140 = vmatpush.msra.mxu2 %v128_v36  ;;  %v171_v56 = vld [vmem:[#allocation2 + $0x1e0] sm:$0xff]  ;;  %v170_v57 = vld [vmem:[#allocation2 + $0x1d8] sm:$0xff]  ;;  %v169_v58 = vld [vmem:[#allocation2 + $0x1d0] sm:$0xff] }
  0x18   :  { %60 = vmatpush.msra.mxu0 %v37_v16  ;;  %181 = vmatpush.msra.mxu3 %v173_v54  ;;  %v168_v59 = vld [vmem:[#allocation2 + $0x1c8] sm:$0xff]  ;;  %v167_v60 = vld [vmem:[#allocation2 + $0x1c0] sm:$0xff]  ;;  %v166_v61 = vld [vmem:[#allocation2 + $0x1b8] sm:$0xff] }
  0x19   :  { %103 = vmatpush.msra.mxu1 %v79_v21  ;;  %141 = vmatpush.msra.mxu2 %v127_v37  ;;  %v165_v62 = vld [vmem:[#allocation2 + $0x1b0] sm:$0xff]  ;;  %v164_v63 = vld [vmem:[#allocation2 + $0x1a8] sm:$0xff]  ;;  %v163_v0 = vld [vmem:[#allocation2 + $0x1a0] sm:$0xff] }
  0x1a   :  { %61 = vmatpush.msra.mxu0 %v36_v18  ;;  %182 = vmatpush.msra.mxu3 %v172_v55  ;;  %v162_v1 = vld [vmem:[#allocation2 + $0x198] sm:$0xff]  ;;  %v388_v2 = vld [vmem:[%s479_s2 + $0x1] ss:$0 sm:$0xff]  ;;  %v161_v6 = vld [vmem:[#allocation2 + $0x190] sm:$0xff] }
  0x1b   :  { %104 = vmatpush.msra.mxu1 %v78_v23  ;;  %142 = vmatpush.msra.mxu2 %v126_v38  ;;  %v160_v7 = vld [vmem:[#allocation2 + $0x188] sm:$0xff]  ;;  %v159_v8 = vld [vmem:[#allocation2 + $0x180] sm:$0xff]  ;;  %v216_v9 = vld [vmem:[#allocation2 + $0x278] sm:$0xff] }
  0x1c   :  { %62 = vmatpush.msra.mxu0 %v35_v20  ;;  %183 = vmatpush.msra.mxu3 %v171_v56  ;;  %v215_v10 = vld [vmem:[#allocation2 + $0x270] sm:$0xff]  ;;  %v214_v11 = vld [vmem:[#allocation2 + $0x268] sm:$0xff]  ;;  %v213_v12 = vld [vmem:[#allocation2 + $0x260] sm:$0xff] }
  0x1d   :  { %105 = vmatpush.msra.mxu1 %v77_v25  ;;  %143 = vmatpush.msra.mxu2 %v125_v39  ;;  %v212_v13 = vld [vmem:[#allocation2 + $0x258] sm:$0xff]  ;;  %v211_v14 = vld [vmem:[#allocation2 + $0x250] sm:$0xff]  ;;  %v210_v15 = vld [vmem:[#allocation2 + $0x248] sm:$0xff] }
  0x1e   :  { %63 = vmatpush.msra.mxu0 %v34_v22  ;;  %184 = vmatpush.msra.mxu3 %v170_v57  ;;  %v209_v16 = vld [vmem:[#allocation2 + $0x240] sm:$0xff]  ;;  %v208_v17 = vld [vmem:[#allocation2 + $0x238] sm:$0xff]  ;;  %v207_v18 = vld [vmem:[#allocation2 + $0x230] sm:$0xff] }
  0x1f   :  { %106 = vmatpush.msra.mxu1 %v76_v27  ;;  %144 = vmatpush.msra.mxu2 %v124_v40  ;;  %v206_v19 = vld [vmem:[#allocation2 + $0x228] sm:$0xff]  ;;  %v205_v20 = vld [vmem:[#allocation2 + $0x220] sm:$0xff]  ;;  %v204_v21 = vld [vmem:[#allocation2 + $0x218] sm:$0xff] }
  0x20   :  { %64 = vmatpush.msra.mxu0 %v33_v24  ;;  %185 = vmatpush.msra.mxu3 %v169_v58  ;;  %v389_v22 = vld [vmem:[%s479_s2 + $0x2] ss:$0 sm:$0xff]  ;;  %v203_v23 = vld [vmem:[#allocation2 + $0x210] sm:$0xff]  ;;  %v202_v27 = vld [vmem:[#allocation2 + $0x208] sm:$0xff] }
  0x21   :  { %107 = vmatpush.msra.mxu1 %v75_v30  ;;  %145 = vmatpush.msra.mxu2 %v123_v41  ;;  %v258_v30 = vld [vmem:[#allocation2 + $0x2f0] sm:$0xff]  ;;  %v255_v33 = vld [vmem:[#allocation2 + $0x2d8] sm:$0xff]  ;;  %v253_v35 = vld [vmem:[#allocation2 + $0x2c8] sm:$0xff] }
  0x22   :  { %65 = vmatpush.msra.mxu0 %v32_v26  ;;  %186 = vmatpush.msra.mxu3 %v168_v59  ;;  %v254_v34 = vld [vmem:[#allocation2 + $0x2d0] sm:$0xff]  ;;  %v252_v36 = vld [vmem:[#allocation2 + $0x2c0] sm:$0xff]  ;;  %v251_v37 = vld [vmem:[#allocation2 + $0x2b8] sm:$0xff] }
  0x23   :  { %108 = vmatpush.msra.mxu1 %v74_v31  ;;  %146 = vmatpush.msra.mxu2 %v122_v42  ;;  %v257_v31 = vld [vmem:[#allocation2 + $0x2e8] sm:$0xff]  ;;  %v250_v38 = vld [vmem:[#allocation2 + $0x2b0] sm:$0xff]  ;;  %v248_v40 = vld [vmem:[#allocation2 + $0x2a0] sm:$0xff] }
  0x24   :  { %66 = vmatpush.msra.mxu0 %v31_v28  ;;  %187 = vmatpush.msra.mxu3 %v167_v60  ;;  %v201_v28 = vld [vmem:[#allocation2 + $0x200] sm:$0xff]  ;;  %v249_v39 = vld [vmem:[#allocation2 + $0x2a8] sm:$0xff]  ;;  %v247_v41 = vld [vmem:[#allocation2 + $0x298] sm:$0xff] }
  0x25   :  { %67 = vmatmul.f32.vlgmr.msra.gmra.mxu0 %v30_v29  ;;  %109 = vmatpush.msra.mxu1 %v73_v32  ;;  %v259_v29 = vld [vmem:[#allocation2 + $0x2f8] sm:$0xff]  ;;  %v256_v32 = vld [vmem:[#allocation2 + $0x2e0] sm:$0xff]  ;;  %v297_v53 = vld [vmem:[#allocation2 + $0x350] sm:$0xff] }
  0x26   :  { %147 = vmatpush.msra.mxu2 %v121_v43  ;;  %188 = vmatpush.msra.mxu3 %v166_v61  ;;  %v390_v42 = vld [vmem:[%s479_s2 + $0x3] ss:$0 sm:$0xff]  ;;  %v296_v54 = vld [vmem:[#allocation2 + $0x348] sm:$0xff]  ;;  %v294_v56 = vld [vmem:[#allocation2 + $0x338] sm:$0xff] }
  0x27   :  { %222 = vmatpush.msrb.mxu0 %v216_v9  ;;  %265 = vmatpush.msrb.mxu1 %v259_v29  ;;  %v295_v55 = vld [vmem:[#allocation2 + $0x340] sm:$0xff]  ;;  %v293_v57 = vld [vmem:[#allocation2 + $0x330] sm:$0xff]  ;;  %v292_v58 = vld [vmem:[#allocation2 + $0x328] sm:$0xff] }
  0x28   :  { %148 = vmatpush.msra.mxu2 %v120_v44  ;;  %189 = vmatpush.msra.mxu3 %v165_v62  ;;  %v291_v59 = vld [vmem:[#allocation2 + $0x320] sm:$0xff]  ;;  %v290_v60 = vld [vmem:[#allocation2 + $0x318] sm:$0xff]  ;;  %v340_v9 = vld [vmem:[#allocation2 + $0x3d0] sm:$0xff] }
  0x29   :  { %223 = vmatpush.msrb.mxu0 %v215_v10  ;;  %266 = vmatpush.msrb.mxu1 %v258_v30  ;;  %v391_v61 = vld [vmem:[%s479_s2 + $0x4] ss:$0 sm:$0xff]  ;;  %v339_v10 = vld [vmem:[#allocation2 + $0x3c8] sm:$0xff] }
  0x2a   :  { %149 = vmatpush.msra.mxu2 %v119_v45  ;;  %190 = vmatpush.msra.mxu3 %v164_v63  ;;  %v246_v45 = vld [vmem:[#allocation2 + $0x290] sm:$0xff] }
  0x2b   :  { %224 = vmatpush.msrb.mxu0 %v214_v11  ;;  %267 = vmatpush.msrb.mxu1 %v257_v31  ;;  %v338_v11 = vld [vmem:[#allocation2 + $0x3c0] sm:$0xff] }
  0x2c   :  { %150 = vmatpush.msra.mxu2 %v118_v50  ;;  %191 = vmatpush.msra.mxu3 %v163_v0  ;;  %v300_v50 = vld [vmem:[#allocation2 + $0x368] sm:$0xff] }
  0x2d   :  { %225 = vmatpush.msrb.mxu0 %v213_v12  ;;  %268 = vmatpush.msrb.mxu1 %v256_v32  ;;  %v337_v12 = vld [vmem:[#allocation2 + $0x3b8] sm:$0xff] }
  0x2e   :  { %151 = vmatpush.msra.mxu2 %v117_v51  ;;  %192 = vmatpush.msra.mxu3 %v162_v1  ;;  %v299_v51 = vld [vmem:[#allocation2 + $0x360] sm:$0xff]  ;;  %v289_v1 = vld [vmem:[#allocation2 + $0x310] sm:$0xff] }
  0x2f   :  { %226 = vmatpush.msrb.mxu0 %v212_v13  ;;  %269 = vmatpush.msrb.mxu1 %v255_v33  ;;  %v336_v13 = vld [vmem:[#allocation2 + $0x3b0] sm:$0xff] }
  0x30   :  { %152 = vmatpush.msra.mxu2 %v116_v52  ;;  %193 = vmatpush.msra.mxu3 %v161_v6  ;;  %v298_v52 = vld [vmem:[#allocation2 + $0x358] sm:$0xff]  ;;  %v343_v6 = vld [vmem:[#allocation2 + $0x3e8] sm:$0xff] }
  0x31   :  { %227 = vmatpush.msrb.mxu0 %v211_v14  ;;  %270 = vmatpush.msrb.mxu1 %v254_v34  ;;  %v335_v14 = vld [vmem:[#allocation2 + $0x3a8] sm:$0xff] }
  0x32   :  { %194 = vmatpush.msra.mxu3 %v160_v7  ;;  %v342_v7 = vld [vmem:[#allocation2 + $0x3e0] sm:$0xff] }
  0x33   :  { %228 = vmatpush.msrb.mxu0 %v210_v15  ;;  %271 = vmatpush.msrb.mxu1 %v253_v35  ;;  %v334_v15 = vld [vmem:[#allocation2 + $0x3a0] sm:$0xff] }
  0x34   :  { %195 = vmatpush.msra.mxu3 %v159_v8  ;;  %v341_v8 = vld [vmem:[#allocation2 + $0x3d8] sm:$0xff] }
  0x35   :  { %229 = vmatpush.msrb.mxu0 %v209_v16  ;;  %272 = vmatpush.msrb.mxu1 %v252_v36  ;;  %v333_v16 = vld [vmem:[#allocation2 + $0x398] sm:$0xff] }
  0x37   :  { %230 = vmatpush.msrb.mxu0 %v208_v17  ;;  %273 = vmatpush.msrb.mxu1 %v251_v37  ;;  %v392_v17 = vld [vmem:[%s479_s2 + $0x5] ss:$0 sm:$0xff] }
  0x39   :  { %231 = vmatpush.msrb.mxu0 %v207_v18  ;;  %274 = vmatpush.msrb.mxu1 %v250_v38 }
  0x3b   :  { %232 = vmatpush.msrb.mxu0 %v206_v19  ;;  %275 = vmatpush.msrb.mxu1 %v249_v39 }
  0x3d   :  { %233 = vmatpush.msrb.mxu0 %v205_v20  ;;  %276 = vmatpush.msrb.mxu1 %v248_v40 }
  0x3f   :  { %234 = vmatpush.msrb.mxu0 %v204_v21  ;;  %277 = vmatpush.msrb.mxu1 %v247_v41  ;;  %v332_v21 = vld [vmem:[#allocation2 + $0x390] sm:$0xff] }
  0x41   :  { %235 = vmatpush.msrb.mxu0 %v203_v23  ;;  %278 = vmatpush.msrb.mxu1 %v246_v45  ;;  %v330_v23 = vld [vmem:[#allocation2 + $0x380] sm:$0xff] }
  0x43   :  { %236 = vmatpush.msrb.mxu0 %v202_v27 }
  0x45   :  { %237 = vmatpush.msrb.mxu0 %v201_v28  ;;  %v394_v28 = vld [vmem:[%s479_s2 + $0x7] ss:$0 sm:$0xff] }
  0xa2   :  { %v68_v47 = vpop.f32.mrf.mxu0 }
  0xa3   :  { %v69_v48 = vadd.f32 %v387_v46, %v68_v47  ;;  %v245_v46 = vld [vmem:[#allocation2 + $0x288] sm:$0xff]  ;;  %v244_v47 = vld [vmem:[#allocation2 + $0x280] sm:$0xff] }
  0xa4   :  { %279 = vmatpush.msrb.mxu1 %v245_v46 }
  0xa5   :  { %v71_v49 = vmax.f32 %v69_v48, 0.0  ;;  %v302_v48 = vld [vmem:[#allocation2 + $0x378] sm:$0xff] }
  0xa6   :  { %280 = vmatpush.msrb.mxu1 %v244_v47  ;;  %308 = vmatpush.msrb.mxu2 %v302_v48 }
  0xa7   :  { %110 = vmatmul.f32.vlgmr.msra.gmra.mxu1 %v71_v49  ;;  %v301_v49 = vld [vmem:[#allocation2 + $0x370] sm:$0xff] }
  0xa8   :  { %309 = vmatpush.msrb.mxu2 %v301_v49 }
  0xaa   :  { %310 = vmatpush.msrb.mxu2 %v300_v50 }
  0xac   :  { %311 = vmatpush.msrb.mxu2 %v299_v51 }
  0xae   :  { %312 = vmatpush.msrb.mxu2 %v298_v52 }
  0xb0   :  { %313 = vmatpush.msrb.mxu2 %v297_v53 }
  0xb2   :  { %314 = vmatpush.msrb.mxu2 %v296_v54 }
  0xb4   :  { %315 = vmatpush.msrb.mxu2 %v295_v55 }
  0xb6   :  { %316 = vmatpush.msrb.mxu2 %v294_v56 }
  0xb8   :  { %317 = vmatpush.msrb.mxu2 %v293_v57 }
  0xba   :  { %318 = vmatpush.msrb.mxu2 %v292_v58 }
  0xbc   :  { %319 = vmatpush.msrb.mxu2 %v291_v59 }
  0xbe   :  { %320 = vmatpush.msrb.mxu2 %v290_v60 }
  0xc0   :  { %321 = vmatpush.msrb.mxu2 %v289_v1 }
 0x124   :  { %v111_v3 = vpop.f32.mrf.mxu1 }
 0x125   :  { %v112_v4 = vadd.f32 %v388_v2, %v111_v3  ;;  %v288_v2 = vld [vmem:[#allocation2 + $0x308] sm:$0xff]  ;;  %v287_v3 = vld [vmem:[#allocation2 + $0x300] sm:$0xff] }
 0x126   :  { %322 = vmatpush.msrb.mxu2 %v288_v2 }
 0x127   :  { %v114_v5 = vmax.f32 %v112_v4, 0.0  ;;  %v345_v4 = vld [vmem:[#allocation2 + $0x3f8] sm:$0xff] }
 0x128   :  { %323 = vmatpush.msrb.mxu2 %v287_v3  ;;  %351 = vmatpush.msrb.mxu3 %v345_v4 }
 0x129   :  { %153 = vmatmul.f32.vlgmr.msra.gmra.mxu2 %v114_v5  ;;  %v344_v5 = vld [vmem:[#allocation2 + $0x3f0] sm:$0xff] }
 0x12a   :  { %352 = vmatpush.msrb.mxu3 %v344_v5 }
 0x12c   :  { %353 = vmatpush.msrb.mxu3 %v343_v6 }
 0x12e   :  { %354 = vmatpush.msrb.mxu3 %v342_v7 }
 0x130   :  { %355 = vmatpush.msrb.mxu3 %v341_v8 }
 0x132   :  { %356 = vmatpush.msrb.mxu3 %v340_v9 }
 0x134   :  { %357 = vmatpush.msrb.mxu3 %v339_v10 }
 0x136   :  { %358 = vmatpush.msrb.mxu3 %v338_v11 }
 0x138   :  { %359 = vmatpush.msrb.mxu3 %v337_v12 }
 0x13a   :  { %360 = vmatpush.msrb.mxu3 %v336_v13 }
 0x13c   :  { %361 = vmatpush.msrb.mxu3 %v335_v14 }
 0x13e   :  { %362 = vmatpush.msrb.mxu3 %v334_v15 }
 0x140   :  { %363 = vmatpush.msrb.mxu3 %v333_v16 }
 0x142   :  { %364 = vmatpush.msrb.mxu3 %v332_v21 }
 0x1ac   :  { %v154_v24 = vpop.f32.mrf.mxu2 }
 0x1ad   :  { %v155_v25 = vadd.f32 %v389_v22, %v154_v24  ;;  %v331_v22 = vld [vmem:[#allocation2 + $0x388] sm:$0xff]  ;;  %v393_v24 = vld [vmem:[%s479_s2 + $0x6] ss:$0 sm:$0xff] }
 0x1ae   :  { %365 = vmatpush.msrb.mxu3 %v331_v22 }
 0x1af   :  { %v157_v26 = vmax.f32 %v155_v25, 0.0 }
 0x1b0   :  { %366 = vmatpush.msrb.mxu3 %v330_v23 }
 0x1b1   :  { %196 = vmatmul.f32.vlgmr.msra.gmra.mxu3 %v157_v26 }
 0x234   :  { %v197_v43 = vpop.f32.mrf.mxu3 }
 0x235   :  { %v198_v44 = vadd.f32 %v390_v42, %v197_v43 }
 0x237   :  { %238 = vmatmul.f32.vlgmr.msrb.gmra.mxu0 %v198_v44 }
 0x2b4   :  { %v239_v62 = vpop.f32.mrf.mxu0 }
 0x2b5   :  { %v240_v63 = vadd.f32 %v391_v61, %v239_v62 }
 0x2b7   :  { %v242_v0 = vmax.f32 %v240_v63, 0.0 }
 0x2b9   :  { %281 = vmatmul.f32.vlgmr.msrb.gmra.mxu1 %v242_v0 }
 0x336   :  { %v282_v18 = vpop.f32.mrf.mxu1 }
 0x337   :  { %v283_v19 = vadd.f32 %v392_v17, %v282_v18 }
 0x339   :  { %v285_v20 = vmax.f32 %v283_v19, 0.0 }
 0x33b   :  { %324 = vmatmul.f32.vlgmr.msrb.gmra.mxu2 %v285_v20 }
 0x3be   :  { %v325_v25 = vpop.f32.mrf.mxu2 }
 0x3bf   :  { %v326_v26 = vadd.f32 %v393_v24, %v325_v25 }
 0x3c1   :  { %v328_v27 = vmax.f32 %v326_v26, 0.0 }
 0x3c3   :  { %367 = vmatmul.f32.vlgmr.msrb.gmra.mxu3 %v328_v27 }
 0x446   :  { %v368_v29 = vpop.f32.mrf.mxu3 }
 0x447   :  { %v369_v30 = vadd.f32 %v394_v28, %v368_v29 }
 0x449   :  { %371 = vst [vmem:[%s480_s3] sm:$0xff] %v369_v30 }
 0x44a   :  { %376 = vsyncpa [#allocation3], 1 }

</bundles_post_ra>
